<compile_context>
chip_gen: v5e
topology: v5e:2x2
jax: 0.10.0
libtpu: 0.0.40
codegen_flags: <defaults>
</compile_context>

<pallas_src>
from functools import partial

import jax
import jax.numpy as jnp
from jax.experimental import pallas as pl
from jax.experimental.pallas import tpu as pltpu


# ----------------------------------------------------------------------------- kernel
def _dain_kernel(mode, eps, t_actual, *refs):
    x_ref = refs[0]
    o_ref = refs[-1]

    x = x_ref[...].astype(jnp.float32)            # (B_BLK, D, T_pad)
    t_pad = x.shape[-1]
    t = jnp.float32(t_actual)

    # Zero padding keeps sum(x) / sum(x^2-of-raw) exact, but the *centered*
    # signal is non-zero in the padded lanes, so mask before that reduction.
    need_mask = (t_pad != t_actual)
    if need_mask:
        lane_ok = jax.lax.broadcasted_iota(jnp.int32, x.shape, 2) < t_actual

    mean_x = jnp.sum(x, axis=-1) / t              # E_T[x], (B_BLK, D)

    if mode == "avg":
        o_ref[...] = (x - mean_x[:, :, None]).astype(o_ref.dtype)
        return

    # ---- adaptive_avg / adaptive_scale / full -------------------------------
    wm = refs[1][...]                             # W_mean, (D, D)
    # torch Linear (no bias): out = stats @ W^T.  Contract the weight's dim 1
    # directly on the MXU; no transposed copy is ever materialized.
    adaptive_avg = jax.lax.dot_general(
        mean_x, wm, (((1,), (1,)), ((), ())), preferred_element_type=jnp.float32)

    xm = x - adaptive_avg[:, :, None]             # centered tile, reused below
    if mode == "adaptive_avg":
        o_ref[...] = xm.astype(o_ref.dtype)
        return

    ws = refs[2][...]                             # W_scale, (D, D)
    # Direct second reduction over the resident tile: free under the HBM DMA
    # and immune to the catastrophic cancellation of the E[x^2]-based form.
    xm_sq = xm * xm
    if need_mask:
        xm_sq = jnp.where(lane_ok, xm_sq, jnp.float32(0.0))
    var = jnp.sum(xm_sq, axis=-1) / t
    std = jnp.sqrt(var + eps)
    adaptive_std = jax.lax.dot_general(
        std, ws, (((1,), (1,)), ((), ())), preferred_element_type=jnp.float32)
    adaptive_std = jnp.where(adaptive_std <= eps, jnp.float32(1.0), adaptive_std)

    # Divide exactly as the reference does (HBM-bound: the divide is hidden).
    x_scaled = xm / adaptive_std[:, :, None]
    if mode == "adaptive_scale":
        o_ref[...] = x_scaled.astype(o_ref.dtype)
        return

    # ---- full ----------------------------------------------------------------
    wg = refs[3][...]                             # W_gate, (D, D)
    bg = refs[4][...]                             # (1, D)
    # mean over (actual) T of the normalized signal, from already-known stats:
    #   mean_T((x - a) / s) = (E_T[x] - a) / s   (padding never enters: algebraic)
    avg2 = (mean_x - adaptive_avg) / adaptive_std
    gate = jax.nn.sigmoid(
        jax.lax.dot_general(avg2, wg, (((1,), (1,)), ((), ())),
                            preferred_element_type=jnp.float32) + bg)
    o_ref[...] = (x_scaled * gate[:, :, None]).astype(o_ref.dtype)


# ----------------------------------------------------------------------------- planning
_WEIGHT_SINGLE_BUFFER_BYTES = 1 << 20     # single-buffer constants above this
_TARGET_STREAM_BYTES = 8 << 20            # ~8 MiB of x per grid step
_MIN_MULTI_STEP_BYTES = 1 << 20           # don't split into sub-1 MiB blocks


def _vmem_budget():
    """Generation-aware scoped-VMEM budget (bytes) with a safe fallback."""
    try:
        info = pltpu.get_tpu_info()
        cap = int(getattr(info, "vmem_capacity_bytes", 64 << 20))
    except Exception:
        cap = 64 << 20                    # conservative: v7x per-core VMEM
    # Leave headroom for compiler-internal scratch; cap the scoped request.
    return max(32 << 20, min(cap * 3 // 4, 96 << 20))


def _vmem_estimate(b_blk, d, t_pad, in_itemsize, weight_bytes, weight_copies):
    """Conservative VMEM footprint: double-buffered I/O blocks in the input
    dtype, ~3 full-size f32 temporaries (x cast, centered tile, pre-cast out),
    the (possibly single-buffered) constants, plus fixed headroom."""
    io_block = b_blk * d * t_pad * in_itemsize
    f32_block = b_blk * d * t_pad * 4
    return 4 * io_block + 3 * f32_block + weight_copies * weight_bytes + (2 << 20)


def _choose_batch_block(batch, d, t_pad, in_itemsize, weight_bytes,
                        weight_copies, vmem_budget):
    """Largest divisor of `batch` whose block fits the VMEM budget and streams
    <= _TARGET_STREAM_BYTES per step, preferring >= 4 grid steps (2 per v7x
    TensorCore), then >= 2, as long as blocks stay >= 1 MiB."""
    per_batch_stream = d * t_pad * in_itemsize
    divisors = [k for k in range(1, batch + 1) if batch % k == 0]
    fits = [k for k in divisors
            if _vmem_estimate(k, d, t_pad, in_itemsize,
                              weight_bytes, weight_copies) <= vmem_budget]
    if not fits:
        # TODO(synk): even a single-batch slab overflows the VMEM budget (very
        # large D*T); a chunked-T two-phase (stats pass + normalize pass)
        # kernel is needed here instead of compiling blind.
        return 1
    capped = [k for k in fits if k * per_batch_stream <= _TARGET_STREAM_BYTES]
    if not capped:
        capped = [fits[0]]
    for steps in (4, 2):
        pick = [k for k in capped if batch // k >= steps]
        if pick and pick[-1] * per_batch_stream >= _MIN_MULTI_STEP_BYTES:
            return pick[-1]
    return capped[-1]


def _const_block_spec(shape, single_buffer):
    """BlockSpec for an operand that is constant across the grid."""
    index_map = lambda g: (0,) * len(shape)
    if single_buffer:
        try:
            return pl.BlockSpec(shape, index_map, pipeline_mode=pl.Buffered(1))
        except Exception:
            pass  # older jax without pipeline_mode/Buffered: fall back
    return pl.BlockSpec(shape, index_map)


# ----------------------------------------------------------------------------- wrapper
def dain_forward(x, w_mean, w_scale, w_gate, b_gate, mode="adaptive_avg", eps=1e-8):
    """Pallas implementation of DAIN_Layer.forward.

    x: (B, D, T).  w_*: (D, D) torch Linear weights.  b_gate: (D,).
    """
    if mode is None:
        return x                          # pure pass-through, no kernel launch
    if mode not in ("avg", "adaptive_avg", "adaptive_scale", "full"):
        raise ValueError(f"unknown DAIN mode: {mode!r}")

    B, D, T = x.shape

    # Lane-dense output: pad T up to a multiple of 128 so the writeback uses
    # unmasked full-lane stores; the pad is sliced off afterwards.  Statistics
    # inside the kernel are computed over the true T.
    T_pad = T if T % 128 == 0 else (T // 128 + 1) * 128
    x_in = x if T_pad == T else jnp.pad(x, ((0, 0), (0, 0), (0, T_pad - T)))

    in_itemsize = jnp.dtype(x.dtype).itemsize

    # Only the weights this mode actually uses are passed (and DMA'd).
    weights = []
    if mode in ("adaptive_avg", "adaptive_scale", "full"):
        weights.append(jnp.asarray(w_mean, jnp.float32))
    if mode in ("adaptive_scale", "full"):
        weights.append(jnp.asarray(w_scale, jnp.float32))
    bias = None
    if mode == "full":
        weights.append(jnp.asarray(w_gate, jnp.float32))
        bias = jnp.asarray(b_gate, jnp.float32).reshape(1, D)

    weight_bytes = len(weights) * D * D * 4 + (D * 4 if bias is not None else 0)
    single_buffer_w = weight_bytes >= _WEIGHT_SINGLE_BUFFER_BYTES
    weight_copies = 1 if single_buffer_w else 2

    budget = _vmem_budget()
    b_blk = _choose_batch_block(B, D, T_pad, in_itemsize,
                                weight_bytes, weight_copies, budget)
    vmem_need = _vmem_estimate(b_blk, D, T_pad, in_itemsize,
                               weight_bytes, weight_copies)
    vmem_limit = int(min(max(vmem_need, 32 << 20), budget))

    x_spec = pl.BlockSpec((b_blk, D, T_pad), lambda g: (g, 0, 0))
    in_specs = [x_spec]
    operands = [x_in]
    for w in weights:
        operands.append(w)
        in_specs.append(_const_block_spec((D, D), single_buffer_w))
    if bias is not None:
        operands.append(bias)
        in_specs.append(_const_block_spec((1, D), single_buffer_w))

    kernel = partial(_dain_kernel, mode, float(eps), T)
    out = pl.pallas_call(
        kernel,
        out_shape=jax.ShapeDtypeStruct((B, D, T_pad), x.dtype),
        grid_spec=pltpu.PrefetchScalarGridSpec(
            num_scalar_prefetch=0,
            grid=(B // b_blk,),
            in_specs=in_specs,
            out_specs=x_spec,
        ),
        compiler_params=pltpu.CompilerParams(
            dimension_semantics=("parallel",),
            vmem_limit_bytes=vmem_limit,
        ),
    )(*operands)

    return out if T_pad == T else out[:, :, :T]


# ----------------------------------------------------------------------------- reference
def dain_reference(x, w_mean, w_scale, w_gate, b_gate, mode="adaptive_avg", eps=1e-8):
    """Pure-JAX reference matching the PyTorch forward exactly."""
    if mode is None:
        return x
    avg = jnp.mean(x, axis=2)                               # (B, D)
    if mode == "avg":
        return x - avg[:, :, None]
    adaptive_avg = avg @ w_mean.T
    x = x - adaptive_avg[:, :, None]
    if mode == "adaptive_avg":
        return x
    std = jnp.sqrt(jnp.mean(x ** 2, axis=2) + eps)
    adaptive_std = std @ w_scale.T
    adaptive_std = jnp.where(adaptive_std <= eps, 1.0, adaptive_std)
    x = x / adaptive_std[:, :, None]
    if mode == "adaptive_scale":
        return x
    avg2 = jnp.mean(x, axis=2)
    gate = jax.nn.sigmoid(avg2 @ w_gate.T + b_gate[None, :])
    return x * gate[:, :, None]


# ----------------------------------------------------------------------------- demo
if __name__ == "__main__":
    # Small synthetic shapes consistent with the module: (batch, input_dim, time).
    # T=128 exercises the lane-dense path; T=120 exercises the pad-T + masked
    # statistics path.  A +3.0 offset makes the mean well away from zero.
    B, D = 4, 32

    key = jax.random.PRNGKey(0)
    kx, kw, kb = jax.random.split(key, 3)

    # Deterministic parameter init mirroring the module's __init__:
    # mean_layer / scaling_layer weights = identity (no bias);
    # gating_layer gets a deterministic random weight + bias.
    w_mean = jnp.eye(D, dtype=jnp.float32)
    w_scale = jnp.eye(D, dtype=jnp.float32)
    w_gate = 0.1 * jax.random.normal(kw, (D, D), dtype=jnp.float32)
    b_gate = 0.1 * jax.random.normal(kb, (D,), dtype=jnp.float32)

    ok = True
    for T in (128, 120):
        x = 3.0 + jax.random.normal(kx, (B, D, T), dtype=jnp.float32)
        for mode in (None, "avg", "adaptive_avg", "adaptive_scale", "full"):
            out = dain_forward(x, w_mean, w_scale, w_gate, b_gate, mode=mode)
            out = jax.block_until_ready(out)
            ref = dain_reference(x, w_mean, w_scale, w_gate, b_gate, mode=mode)
            ok &= bool(jnp.allclose(out, ref, atol=1e-5, rtol=1e-5))

    if ok:
        print("KERNEL_OK")
    else:
        print("MISMATCH")
</pallas_src>

<mosaic_0001>
module attributes {stable_mosaic.version = 11 : i64} {
  func.func @_dain_kernel(%arg0: i32, %arg1: memref<4x32x128xf32, #tpu.memory_space<vmem>>, %arg2: memref<4x32x128xf32, #tpu.memory_space<vmem>>) attributes {dimension_semantics = [#tpu.dimension_semantics<parallel>], iteration_bounds = array<i64: 1>, scalar_prefetch = 0 : i64, scratch_operands = 0 : i64, tpu.core_type = #tpu.core_type<tc>, window_params = [{transform_indices = @transform_0, window_bounds = array<i64: 4, 32, 128>}, {transform_indices = @transform_1, window_bounds = array<i64: 4, 32, 128>}]} {
    %c0 = arith.constant 0 : index
    %c0_0 = arith.constant 0 : index
    %c0_1 = arith.constant 0 : index
    %0 = vector.load %arg1[%c0, %c0_0, %c0_1] : memref<4x32x128xf32, #tpu.memory_space<vmem>>, vector<4x32x128xf32>
    %cst = arith.constant dense<0.000000e+00> : vector<4x32xf32>
    %1 = vector.multi_reduction <add>, %0, %cst [2] : vector<4x32x128xf32> to vector<4x32xf32>
    %cst_2 = arith.constant 1.280000e+02 : f32
    %2 = vector.broadcast %cst_2 : f32 to vector<4x32xf32>
    %3 = arith.divf %1, %2 : vector<4x32xf32>
    %4 = vector.shape_cast %3 : vector<4x32xf32> to vector<4x32x1xf32>
    %5 = vector.broadcast %4 : vector<4x32x1xf32> to vector<4x32x128xf32>
    %6 = arith.subf %0, %5 : vector<4x32x128xf32>
    %c0_3 = arith.constant 0 : index
    %c0_4 = arith.constant 0 : index
    %c0_5 = arith.constant 0 : index
    %7 = vector.load %arg2[%c0_3, %c0_4, %c0_5] : memref<4x32x128xf32, #tpu.memory_space<vmem>>, vector<4x32x128xf32>
    tpu.vector_store %arg2[%c0_3, %c0_4, %c0_5], %6 {strides = array<i32>} : memref<4x32x128xf32, #tpu.memory_space<vmem>>, vector<4x32x128xf32>,
    return
  }
  func.func @transform_0(%arg0: i32) -> (i32, i32, i32) {
    %c0_i32 = arith.constant 0 : i32
    %c0_i32_0 = arith.constant 0 : i32
    %c0_i32_1 = arith.constant 0 : i32
    return %arg0, %c0_i32, %c0_i32_0 : i32, i32, i32
  }
  func.func @transform_1(%arg0: i32) -> (i32, i32, i32) {
    %c0_i32 = arith.constant 0 : i32
    %c0_i32_0 = arith.constant 0 : i32
    %c0_i32_1 = arith.constant 0 : i32
    return %arg0, %c0_i32, %c0_i32_0 : i32, i32, i32
  }
}

</mosaic_0001>

<bundles_post_ra>
// kernel: tpu_custom_call.1
= control target key start
LH: loop header
LB: loop body
LE: loop exit
PB: predicated region body
PF: predicated region fallthrough
CT: control target
= control target key end

     0   :  { %6 = vsyncpa [#allocation3], 0  ;;  %s279_s0 = inlined_call_operand.hbm [shape: f32[4,32,128], index: 0, kind: input, shape index: {}]   ;;  %s280_s1 = inlined_call_operand.hbm [shape: f32[4,32,128], index: 1, kind: output, shape index: {}]  }
   0x1   :  { %7 = vsyncpa [#allocation4], 0  ;;  %s12_s8 = sshll.u32 %s279_s0, 4  ;;  %s206_s9 = smov [#allocation2]   ;;  %s13_s8 = int_to_ptr.hbm [resolvable:$true] %s12_s8 }
   0x2   :  { %s14_s10 = sshll.u32 %s206_s9, 4  ;;  %s207_s11 = smov 128   ;;  %s15_s10 = int_to_ptr.vmem [resolvable:$true] %s14_s10 }
   0x3   :  { %s208_s12 = smov 8  }
   0x4   :  { %20 = dma.hbm_to_vmem [thread:$0]  %s13_s8, 2048, %s15_s10, [#allocation3], %s207_s11, %s207_s11, %s208_s12  }
   0x5   :  { %202 = dma.done.wait [#allocation3], 2048  }
   0x6   :  { %203 = vsyncadd [#allocation3], 4294965248  ;;  %v25_v0 = vld [vmem:[#allocation2] sm:$0xff]  ;;  %v27_v2 = vld [vmem:[#allocation2 + $0x10] sm:$0xff]  ;;  %v209_v16 = vmov 128.0   ;;  %s210_s0 = smov [#allocation5]  }
   0x7   :  { %v29_v1 = vld [vmem:[#allocation2 + $0x20] sm:$0xff]  ;;  %41 = vadd.xlane.f32.xlu0 %v25_v0  ;;  %45 = vadd.xlane.f32.xlu1 %v27_v2  ;;  %v26_v3 = vld [vmem:[#allocation2 + $0x8] sm:$0xff]  ;;  %v28_v5 = vld [vmem:[#allocation2 + $0x18] sm:$0xff]  ;;  %152 = vrcp.f32 %v209_v16  ;;  %s132_s13 = sshll.u32 %s210_s0, 4  ;;  %s134_s16 = sshll.u32 %s280_s1, 4  ;;  %s133_s13 = int_to_ptr.vmem [resolvable:$true] %s132_s13  ;;  %s135_s16 = int_to_ptr.hbm [resolvable:$true] %s134_s16 }
   0x8   :  { %49 = vadd.xlane.f32.xlu2 %v29_v1  ;;  %v30_v4 = vld [vmem:[#allocation2 + $0x28] sm:$0xff]  ;;  %v31_v6 = vld [vmem:[#allocation2 + $0x30] sm:$0xff]  ;;  %v33_v7 = vld [vmem:[#allocation2 + $0x40] sm:$0xff] }
   0x9   :  { %v32_v8 = vld [vmem:[#allocation2 + $0x38] sm:$0xff]  ;;  %v227_v9 = vld [vmem:[#allocation2 + $0x48] sm:$0xff]  ;;  %v231_v11 = vld [vmem:[#allocation2 + $0x50] sm:$0xff] }
   0xa   :  { %v229_v10 = vld [vmem:[#allocation2 + $0x58] sm:$0xff]  ;;  %v236_v12 = vld [vmem:[#allocation2 + $0x60] sm:$0xff]  ;;  %v238_v13 = vld [vmem:[#allocation2 + $0x70] sm:$0xff] }
   0xb   :  { %v240_v14 = vld [vmem:[#allocation2 + $0x68] sm:$0xff]  ;;  %v245_v15 = vld [vmem:[#allocation2 + $0x78] sm:$0xff] }
   0xd   :  { %v153_v17 = vpop.eup %152 }
   0xe   :  { %v74_v18 = vmul.f32 128.0, %v153_v17  ;;  %vm78_vm0 = vweird.f32 %v153_v17 }
   0xf   :  { %43 = vadd.xlane.f32.xlu0 %v26_v3  ;;  %47 = vadd.xlane.f32.xlu1 %v28_v5 }
  0x10   :  { %51 = vadd.xlane.f32.xlu2 %v30_v4  ;;  %v75_v19 = vsub.f32 1.0, %v74_v18 }
  0x12   :  { %v76_v20 = vmul.f32 %v153_v17, %v75_v19 }
  0x14   :  { %v77_v21 = vadd.f32 %v153_v17, %v76_v20 }
  0x16   :  { %v248_v22 = vsel %vm78_vm0, %v153_v17, %v77_v21 }
  0x17   :  { %53 = vadd.xlane.f32.xlu0 %v31_v6  ;;  %55 = vadd.xlane.f32.xlu1 %v32_v8 }
  0x18   :  { %57 = vadd.xlane.f32.xlu2 %v33_v7 }
  0x1f   :  { %59 = vadd.xlane.f32.xlu0 %v227_v9  ;;  %61 = vadd.xlane.f32.xlu1 %v231_v11 }
  0x20   :  { %63 = vadd.xlane.f32.xlu2 %v229_v10 }
  0x27   :  { %65 = vadd.xlane.f32.xlu0 %v236_v12  ;;  %67 = vadd.xlane.f32.xlu1 %v240_v14 }
  0x28   :  { %69 = vadd.xlane.f32.xlu2 %v238_v13 }
  0x2f   :  { %71 = vadd.xlane.f32.xlu0 %v245_v15 }
  0x7a   :  { %v42_v23 = vpop.xlane.xlu0 %41  ;;  %v46_v27 = vpop.xlane.xlu1 %45 }
  0x7b   :  { %v50_v24 = vpop.xlane.xlu2 %49  ;;  %v80_v25 = vmul.f32 %v248_v22, %v42_v23  ;;  %v82_v28 = vmul.f32 %v248_v22, %v46_v27 }
  0x7c   :  { %v84_v26 = vmul.f32 %v248_v22, %v50_v24 }
  0x7d   :  { %v96_v29 = vsub.f32 %v25_v0, %v80_v25  ;;  %v98_v31 = vsub.f32 %v27_v2, %v82_v28 }
  0x7e   :  { %v100_v30 = vsub.f32 %v29_v1, %v84_v26 }
  0x7f   :  { %112 = vst [vmem:[#allocation5] sm:$0xff] %v96_v29 }
  0x80   :  { %116 = vst [vmem:[#allocation5 + $0x20] sm:$0xff] %v100_v30 }
  0x81   :  { %114 = vst [vmem:[#allocation5 + $0x10] sm:$0xff] %v98_v31 }
  0x82   :  { %v44_v32 = vpop.xlane.xlu0 %43  ;;  %v48_v36 = vpop.xlane.xlu1 %47 }
  0x83   :  { %v52_v33 = vpop.xlane.xlu2 %51  ;;  %v81_v34 = vmul.f32 %v248_v22, %v44_v32  ;;  %v83_v37 = vmul.f32 %v248_v22, %v48_v36 }
  0x84   :  { %v85_v35 = vmul.f32 %v248_v22, %v52_v33 }
  0x85   :  { %v97_v38 = vsub.f32 %v26_v3, %v81_v34  ;;  %v99_v40 = vsub.f32 %v28_v5, %v83_v37 }
  0x86   :  { %v101_v39 = vsub.f32 %v30_v4, %v85_v35 }
  0x87   :  { %113 = vst [vmem:[#allocation5 + $0x8] sm:$0xff] %v97_v38 }
  0x88   :  { %117 = vst [vmem:[#allocation5 + $0x28] sm:$0xff] %v101_v39 }
  0x89   :  { %115 = vst [vmem:[#allocation5 + $0x18] sm:$0xff] %v99_v40 }
  0x8a   :  { %v54_v41 = vpop.xlane.xlu0 %53  ;;  %v56_v45 = vpop.xlane.xlu1 %55 }
  0x8b   :  { %v58_v42 = vpop.xlane.xlu2 %57  ;;  %v86_v43 = vmul.f32 %v248_v22, %v54_v41  ;;  %v87_v46 = vmul.f32 %v248_v22, %v56_v45 }
  0x8c   :  { %v88_v44 = vmul.f32 %v248_v22, %v58_v42 }
  0x8d   :  { %v102_v47 = vsub.f32 %v31_v6, %v86_v43  ;;  %v103_v49 = vsub.f32 %v32_v8, %v87_v46 }
  0x8e   :  { %v104_v48 = vsub.f32 %v33_v7, %v88_v44 }
  0x8f   :  { %118 = vst [vmem:[#allocation5 + $0x30] sm:$0xff] %v102_v47 }
  0x90   :  { %120 = vst [vmem:[#allocation5 + $0x40] sm:$0xff] %v104_v48 }
  0x91   :  { %119 = vst [vmem:[#allocation5 + $0x38] sm:$0xff] %v103_v49 }
  0x92   :  { %v60_v50 = vpop.xlane.xlu0 %59  ;;  %v62_v54 = vpop.xlane.xlu1 %61 }
  0x93   :  { %v64_v51 = vpop.xlane.xlu2 %63  ;;  %v89_v52 = vmul.f32 %v248_v22, %v60_v50  ;;  %v90_v55 = vmul.f32 %v248_v22, %v62_v54 }
  0x94   :  { %v91_v53 = vmul.f32 %v248_v22, %v64_v51 }
  0x95   :  { %v105_v56 = vsub.f32 %v227_v9, %v89_v52  ;;  %v106_v58 = vsub.f32 %v231_v11, %v90_v55 }
  0x96   :  { %v107_v57 = vsub.f32 %v229_v10, %v91_v53 }
  0x97   :  { %121 = vst [vmem:[#allocation5 + $0x48] sm:$0xff] %v105_v56 }
  0x98   :  { %123 = vst [vmem:[#allocation5 + $0x58] sm:$0xff] %v107_v57 }
  0x99   :  { %122 = vst [vmem:[#allocation5 + $0x50] sm:$0xff] %v106_v58 }
  0x9a   :  { %v66_v59 = vpop.xlane.xlu0 %65  ;;  %v68_v63 = vpop.xlane.xlu1 %67 }
  0x9b   :  { %v70_v60 = vpop.xlane.xlu2 %69  ;;  %v92_v61 = vmul.f32 %v248_v22, %v66_v59  ;;  %v93_v0 = vmul.f32 %v248_v22, %v68_v63 }
  0x9c   :  { %v94_v62 = vmul.f32 %v248_v22, %v70_v60 }
  0x9d   :  { %v108_v1 = vsub.f32 %v236_v12, %v92_v61  ;;  %v109_v3 = vsub.f32 %v240_v14, %v93_v0 }
  0x9e   :  { %v110_v2 = vsub.f32 %v238_v13, %v94_v62 }
  0x9f   :  { %124 = vst [vmem:[#allocation5 + $0x60] sm:$0xff] %v108_v1 }
  0xa0   :  { %126 = vst [vmem:[#allocation5 + $0x70] sm:$0xff] %v110_v2 }
  0xa1   :  { %125 = vst [vmem:[#allocation5 + $0x68] sm:$0xff] %v109_v3 }
  0xa2   :  { %v72_v4 = vpop.xlane.xlu0 %71 }
  0xa3   :  { %v95_v5 = vmul.f32 %v248_v22, %v72_v4 }
  0xa5   :  { %v111_v6 = vsub.f32 %v245_v15, %v95_v5 }
  0xa7   :  { %127 = vst [vmem:[#allocation5 + $0x78] sm:$0xff] %v111_v6 }
  0xa8   :  { %140 = dma.vmem_to_hbm [thread:$0]  %s133_s13, 2048, %s135_s16, [#allocation4], %s207_s11, %s207_s11, %s208_s12  }
  0xa9   :  { %204 = dma.done.wait [#allocation4], 2048  }
  0xaa   :  { %205 = vsyncadd [#allocation4], 4294965248 }
  0xab   :  { %145 = vsyncpa [#allocation3], 1 }
  0xac   :  { %146 = vsyncpa [#allocation4], 1 }

</bundles_post_ra>
